<compile_context>
chip_gen: v7x
topology: tpu7x:2x2x1
jax: 0.10.0
libtpu: 0.0.40
codegen_flags: <defaults>
</compile_context>

<pallas_src>
import jax
import jax.numpy as jnp
from jax import lax
from jax.experimental import pallas as pl
from jax.experimental.pallas import tpu as pltpu

LN_EPS = 1e-5


def _gelu_exact(v):
    # PyTorch nn.GELU() default = exact erf formulation (f32 math).
    return 0.5 * v * (1.0 + lax.erf(v / jnp.sqrt(2.0).astype(v.dtype)))


def _layer_norm(v, gamma, beta):
    mu = jnp.mean(v, axis=-1, keepdims=True)
    var = jnp.mean((v - mu) ** 2, axis=-1, keepdims=True)
    return (v - mu) * lax.rsqrt(var + LN_EPS) * gamma + beta


def mixer_block_kernel(
    x_ref,                     # (Bb, N, D)  activations (f32)
    g1_ref, be1_ref,           # (1, D)      LayerNorm 1 weight/bias (f32)
    w1_ref, b1_ref,            # (T, N) bf16, (T, 1) f32  token-mix Linear(N -> T)
    w2_ref, b2_ref,            # (N, T) bf16, (N, 1) f32  token-mix Linear(T -> N)
    g2_ref, be2_ref,           # (1, D)      LayerNorm 2 weight/bias (f32)
    w3t_ref, b3_ref,           # (D, C) bf16, (1, C) f32  channel-mix Linear(D -> C), pre-transposed
    w4t_ref, b4_ref,           # (C, D) bf16, (1, D) f32  channel-mix Linear(C -> D), pre-transposed
    o_ref,                     # (Bb, N, D)  output
    xt_ref,                    # (Bb, N, D)  f32 VMEM scratch: x + token_mix(x)
):
    bb, n, d = x_ref.shape

    g1, be1 = g1_ref[...], be1_ref[...]
    w1, b1 = w1_ref[...], b1_ref[...]
    w2, b2 = w2_ref[...], b2_ref[...]

    # ---- token mixing: per batch element -------------------------------
    # Static unrolled loop (equivalent to lax.fori_loop(..., unroll=True) for a
    # small static Bb); static leading-dim indices keep the lowering trivial.
    for b in range(bb):
        xb = x_ref[b].astype(jnp.float32)                           # (N, D)
        ln1 = _layer_norm(xb, g1, be1)                              # f32
        # (T, N) @ (N, D) -> (T, D): Linear over the token axis, no transpose.
        h = jnp.dot(w1, ln1.astype(w1.dtype),
                    preferred_element_type=jnp.float32) + b1
        h = _gelu_exact(h)
        tok = jnp.dot(w2, h.astype(w2.dtype),
                      preferred_element_type=jnp.float32) + b2      # (N, D)
        xt_ref[b] = xb + tok                                        # residual, f32

    # ---- channel mixing: all Bb*N rows at once --------------------------
    w3t, b3 = w3t_ref[...], b3_ref[...]
    w4t, b4 = w4t_ref[...], b4_ref[...]

    xt = xt_ref[...].reshape(bb * n, d)                             # f32, layout-preserving
    ln2 = _layer_norm(xt, g2_ref[...], be2_ref[...])
    h2 = jnp.dot(ln2.astype(w3t.dtype), w3t,
                 preferred_element_type=jnp.float32) + b3           # (Bb*N, C)
    h2 = _gelu_exact(h2)
    ch = jnp.dot(h2.astype(w4t.dtype), w4t,
                 preferred_element_type=jnp.float32) + b4           # (Bb*N, D)

    o_ref[...] = (xt + ch).reshape(bb, n, d).astype(o_ref.dtype)


def _pick_block_b(total_b, n, target_rows=256):
    """Largest divisor of B that (a) keeps >= 2 grid steps when B >= 2 (feeds both
    v7x TensorCores via the 'parallel' grid axis) and (b) packs ~target_rows rows
    into the channel-mix matmul M dimension."""
    cap = min(max(total_b // 2, 1), max(pl.cdiv(target_rows, n), 1))
    for bb in range(cap, 0, -1):
        if total_b % bb == 0:
            return bb
    return 1


def mixer_block(x, params, *, block_b=None):
    """x: (B, N, D) float32. params: dict of weights (see init_params)."""
    B, N, D = x.shape
    T = params["w1"].shape[0]
    C = params["w3t"].shape[1]

    bb = _pick_block_b(B, N) if block_b is None else block_b
    assert B % bb == 0, f"block_b={bb} must divide batch={B}"
    grid = (B // bb,)

    # Grid-invariant operands: single-buffered (they are fetched once and
    # reused every grid step), halving their VMEM footprint vs. the default
    # double-buffering.
    def const_spec(shape):
        nd = len(shape)
        return pl.BlockSpec(shape, lambda i: (0,) * nd,
                            pipeline_mode=pl.Buffered(buffer_count=1))

    in_specs = [
        pl.BlockSpec((bb, N, D), lambda i: (i, 0, 0)),   # x
        const_spec((1, D)), const_spec((1, D)),          # LN1 gamma/beta
        const_spec((T, N)), const_spec((T, 1)),          # token-mix W1/b1
        const_spec((N, T)), const_spec((N, 1)),          # token-mix W2/b2
        const_spec((1, D)), const_spec((1, D)),          # LN2 gamma/beta
        const_spec((D, C)), const_spec((1, C)),          # channel-mix W3^T/b3
        const_spec((C, D)), const_spec((1, D)),          # channel-mix W4^T/b4
    ]

    # --- VMEM budget: single-buffered weights + double-buffered x/out tiles
    #     + f32 scratch + headroom for the (Bb*N, C) intermediates.
    weight_bytes = sum(int(v.size) * v.dtype.itemsize for v in params.values())
    io_bytes = 2 * 2 * bb * N * D * x.dtype.itemsize     # x + out, 2 buffers each
    scratch_bytes = bb * N * D * 4
    interm_bytes = 2 * bb * N * C * 4
    needed = weight_bytes + io_bytes + scratch_bytes + interm_bytes + (4 << 20)
    # TODO(synk): for very large channel_dim where w3t/w4t do not fit v7x's
    # 64 MiB VMEM, add a reduction grid axis that streams C-blocks of w3t/w4t
    # (accumulate in a VMEM scratch, mark that axis "arbitrary") instead of
    # keeping them fully resident.
    vmem_limit = int(min(max(needed, 32 << 20), 64 << 20))

    cost = pl.CostEstimate(
        flops=4 * B * N * D * (T + C),                   # the four matmuls
        transcendentals=B * (T * D + N * C),             # two erf-GELU sites
        bytes_accessed=int(2 * B * N * D * x.dtype.itemsize + weight_bytes),
    )

    return pl.pallas_call(
        mixer_block_kernel,
        out_shape=jax.ShapeDtypeStruct((B, N, D), x.dtype),
        grid=grid,
        in_specs=in_specs,
        out_specs=pl.BlockSpec((bb, N, D), lambda i: (i, 0, 0)),
        scratch_shapes=[pltpu.VMEM((bb, N, D), jnp.float32)],
        compiler_params=pltpu.CompilerParams(
            dimension_semantics=("parallel",),
            vmem_limit_bytes=vmem_limit,
        ),
        cost_estimate=cost,
    )(
        x,
        params["g1"], params["be1"],
        params["w1"], params["b1"],
        params["w2"], params["b2"],
        params["g2"], params["be2"],
        params["w3t"], params["b3"],
        params["w4t"], params["b4"],
    )


def init_params(key, dim, num_patch, token_dim, channel_dim):
    ks = jax.random.split(key, 8)
    s = 0.02
    f32, bf16 = jnp.float32, jnp.bfloat16
    return {
        # LayerNorm 1 (token-mix branch)
        "g1": jnp.ones((1, dim), f32),
        "be1": jnp.zeros((1, dim), f32),
        # token-mix FeedForward: Linear(num_patch -> token_dim), Linear(token_dim -> num_patch)
        # matmul weights stored bf16 (halved HBM/DMA bytes, bf16 MXU operands)
        "w1": (s * jax.random.normal(ks[0], (token_dim, num_patch), f32)).astype(bf16),
        "b1": s * jax.random.normal(ks[1], (token_dim, 1), f32),
        "w2": (s * jax.random.normal(ks[2], (num_patch, token_dim), f32)).astype(bf16),
        "b2": s * jax.random.normal(ks[3], (num_patch, 1), f32),
        # LayerNorm 2 (channel-mix branch)
        "g2": jnp.ones((1, dim), f32),
        "be2": jnp.zeros((1, dim), f32),
        # channel-mix FeedForward: Linear(dim -> channel_dim), Linear(channel_dim -> dim)
        # stored pre-transposed so the kernel does ln2 @ W3^T directly
        "w3t": (s * jax.random.normal(ks[4], (dim, channel_dim), f32)).astype(bf16),
        "b3": s * jax.random.normal(ks[5], (1, channel_dim), f32),
        "w4t": (s * jax.random.normal(ks[6], (channel_dim, dim), f32)).astype(bf16),
        "b4": s * jax.random.normal(ks[7], (1, dim), f32),
    }


def mixer_block_ref(x, p):
    """Pure-JAX reference matching the PyTorch forward exactly (weights upcast to f32)."""
    f32 = lambda a: a.astype(jnp.float32)

    def ln(v, g, b):
        mu = jnp.mean(v, axis=-1, keepdims=True)
        var = jnp.mean((v - mu) ** 2, axis=-1, keepdims=True)
        return (v - mu) / jnp.sqrt(var + LN_EPS) * g + b

    gelu = lambda v: 0.5 * v * (1.0 + jax.lax.erf(v / jnp.sqrt(2.0)))

    # token mix
    y = ln(x, p["g1"][0], p["be1"][0])                    # (B, N, D)
    y = jnp.swapaxes(y, 1, 2)                             # (B, D, N)
    y = gelu(jnp.einsum("bdn,tn->bdt", y, f32(p["w1"])) + p["b1"][:, 0])
    y = jnp.einsum("bdt,nt->bdn", y, f32(p["w2"])) + p["b2"][:, 0]
    y = jnp.swapaxes(y, 1, 2)                             # (B, N, D)
    x = x + y
    # channel mix
    z = ln(x, p["g2"][0], p["be2"][0])
    z = gelu(jnp.einsum("bnd,dc->bnc", z, f32(p["w3t"])) + p["b3"][0])
    z = jnp.einsum("bnc,cd->bnd", z, f32(p["w4t"])) + p["b4"][0]
    return x + z


if __name__ == "__main__":
    B, N, D = 4, 8, 32           # batch, num_patch, dim
    token_dim, channel_dim = 16, 64

    key = jax.random.PRNGKey(0)
    kx, kp = jax.random.split(key)
    x = jax.random.normal(kx, (B, N, D), jnp.float32)
    params = init_params(kp, D, N, token_dim, channel_dim)

    out = mixer_block(x, params)
    out = jax.block_until_ready(out)

    ref = mixer_block_ref(x, params)
    assert out.shape == (B, N, D)
    # bf16 MXU operands (f32 accumulation) -> loosened tolerance vs f32 reference
    assert jnp.allclose(out, ref, atol=1e-2, rtol=1e-2), "mismatch vs reference"

    print("KERNEL_OK")
</pallas_src>

<mosaic_0001>
module attributes {stable_mosaic.version = 11 : i64} {
  func.func @mixer_block_kernel(%arg0: i32, %arg1: memref<2x8x32xf32, #tpu.memory_space<vmem>>, %arg2: memref<1x32xf32, #tpu.memory_space<vmem>>, %arg3: memref<1x32xf32, #tpu.memory_space<vmem>>, %arg4: memref<16x8xbf16, #tpu.memory_space<vmem>>, %arg5: memref<16x1xf32, #tpu.memory_space<vmem>>, %arg6: memref<8x16xbf16, #tpu.memory_space<vmem>>, %arg7: memref<8x1xf32, #tpu.memory_space<vmem>>, %arg8: memref<1x32xf32, #tpu.memory_space<vmem>>, %arg9: memref<1x32xf32, #tpu.memory_space<vmem>>, %arg10: memref<32x64xbf16, #tpu.memory_space<vmem>>, %arg11: memref<1x64xf32, #tpu.memory_space<vmem>>, %arg12: memref<64x32xbf16, #tpu.memory_space<vmem>>, %arg13: memref<1x32xf32, #tpu.memory_space<vmem>>, %arg14: memref<2x8x32xf32, #tpu.memory_space<vmem>>, %arg15: memref<2x8x32xf32, #tpu.memory_space<vmem>>) attributes {dimension_semantics = [#tpu.dimension_semantics<parallel>], iteration_bounds = array<i64: 2>, scalar_prefetch = 0 : i64, scratch_operands = 1 : i64, tpu.core_type = #tpu.core_type<tc>, window_params = [{transform_indices = @transform_0, window_bounds = array<i64: 2, 8, 32>}, {pipeline_mode = #tpu.pipeline_mode<synchronous>, transform_indices = @transform_1, window_bounds = array<i64: 1, 32>}, {pipeline_mode = #tpu.pipeline_mode<synchronous>, transform_indices = @transform_2, window_bounds = array<i64: 1, 32>}, {pipeline_mode = #tpu.pipeline_mode<synchronous>, transform_indices = @transform_3, window_bounds = array<i64: 16, 8>}, {pipeline_mode = #tpu.pipeline_mode<synchronous>, transform_indices = @transform_4, window_bounds = array<i64: 16, 1>}, {pipeline_mode = #tpu.pipeline_mode<synchronous>, transform_indices = @transform_5, window_bounds = array<i64: 8, 16>}, {pipeline_mode = #tpu.pipeline_mode<synchronous>, transform_indices = @transform_6, window_bounds = array<i64: 8, 1>}, {pipeline_mode = #tpu.pipeline_mode<synchronous>, transform_indices = @transform_7, window_bounds = array<i64: 1, 32>}, {pipeline_mode = #tpu.pipeline_mode<synchronous>, transform_indices = @transform_8, window_bounds = array<i64: 1, 32>}, {pipeline_mode = #tpu.pipeline_mode<synchronous>, transform_indices = @transform_9, window_bounds = array<i64: 32, 64>}, {pipeline_mode = #tpu.pipeline_mode<synchronous>, transform_indices = @transform_10, window_bounds = array<i64: 1, 64>}, {pipeline_mode = #tpu.pipeline_mode<synchronous>, transform_indices = @transform_11, window_bounds = array<i64: 64, 32>}, {pipeline_mode = #tpu.pipeline_mode<synchronous>, transform_indices = @transform_12, window_bounds = array<i64: 1, 32>}, {transform_indices = @transform_13, window_bounds = array<i64: 2, 8, 32>}]} {
    %c0 = arith.constant 0 : index
    %c0_0 = arith.constant 0 : index
    %0 = vector.load %arg2[%c0, %c0_0] : memref<1x32xf32, #tpu.memory_space<vmem>>, vector<1x32xf32>
    %c0_1 = arith.constant 0 : index
    %c0_2 = arith.constant 0 : index
    %1 = vector.load %arg3[%c0_1, %c0_2] : memref<1x32xf32, #tpu.memory_space<vmem>>, vector<1x32xf32>
    %c0_3 = arith.constant 0 : index
    %c0_4 = arith.constant 0 : index
    %2 = vector.load %arg4[%c0_3, %c0_4] : memref<16x8xbf16, #tpu.memory_space<vmem>>, vector<16x8xbf16>
    %c0_5 = arith.constant 0 : index
    %c0_6 = arith.constant 0 : index
    %3 = vector.load %arg5[%c0_5, %c0_6] : memref<16x1xf32, #tpu.memory_space<vmem>>, vector<16x1xf32>
    %c0_7 = arith.constant 0 : index
    %c0_8 = arith.constant 0 : index
    %4 = vector.load %arg6[%c0_7, %c0_8] : memref<8x16xbf16, #tpu.memory_space<vmem>>, vector<8x16xbf16>
    %c0_9 = arith.constant 0 : index
    %c0_10 = arith.constant 0 : index
    %5 = vector.load %arg7[%c0_9, %c0_10] : memref<8x1xf32, #tpu.memory_space<vmem>>, vector<8x1xf32>
    %c0_11 = arith.constant 0 : index
    %c0_12 = arith.constant 0 : index
    %c0_13 = arith.constant 0 : index
    %6 = vector.load %arg1[%c0_11, %c0_12, %c0_13] : memref<2x8x32xf32, #tpu.memory_space<vmem>>, vector<1x8x32xf32>
    %7 = vector.shape_cast %6 : vector<1x8x32xf32> to vector<8x32xf32>
    %cst = arith.constant dense<0.000000e+00> : vector<8xf32>
    %8 = vector.multi_reduction <add>, %7, %cst [1] : vector<8x32xf32> to vector<8xf32>
    %9 = vector.shape_cast %8 : vector<8xf32> to vector<8x1xf32>
    %cst_14 = arith.constant 3.200000e+01 : f32
    %10 = vector.broadcast %cst_14 : f32 to vector<8x1xf32>
    %11 = arith.divf %9, %10 : vector<8x1xf32>
    %12 = vector.broadcast %11 : vector<8x1xf32> to vector<8x32xf32>
    %13 = arith.subf %7, %12 : vector<8x32xf32>
    %14 = arith.mulf %13, %13 : vector<8x32xf32>
    %cst_15 = arith.constant dense<0.000000e+00> : vector<8xf32>
    %15 = vector.multi_reduction <add>, %14, %cst_15 [1] : vector<8x32xf32> to vector<8xf32>
    %16 = vector.shape_cast %15 : vector<8xf32> to vector<8x1xf32>
    %cst_16 = arith.constant 3.200000e+01 : f32
    %17 = vector.broadcast %cst_16 : f32 to vector<8x1xf32>
    %18 = arith.divf %16, %17 : vector<8x1xf32>
    %19 = vector.broadcast %11 : vector<8x1xf32> to vector<8x32xf32>
    %20 = arith.subf %7, %19 : vector<8x32xf32>
    %cst_17 = arith.constant 9.99999974E-6 : f32
    %21 = vector.broadcast %cst_17 : f32 to vector<8x1xf32>
    %22 = arith.addf %18, %21 : vector<8x1xf32>
    %23 = math.rsqrt %22 : vector<8x1xf32>
    %24 = vector.broadcast %23 : vector<8x1xf32> to vector<8x32xf32>
    %25 = arith.mulf %20, %24 : vector<8x32xf32>
    %26 = vector.broadcast %0 : vector<1x32xf32> to vector<8x32xf32>
    %27 = arith.mulf %25, %26 : vector<8x32xf32>
    %28 = vector.broadcast %1 : vector<1x32xf32> to vector<8x32xf32>
    %29 = arith.addf %27, %28 : vector<8x32xf32>
    %30 = arith.truncf %29 : vector<8x32xf32> to vector<8x32xbf16>
    %cst_18 = arith.constant dense<0.000000e+00> : vector<16x32xf32>
    %31 = tpu.matmul %2, %30, %cst_18 {dimension_numbers = #tpu.dot_dimension_numbers<[1], [0], [0], [1], [0, 0, 1, 1], [], []>} : vector<16x8xbf16>, vector<8x32xbf16>, vector<16x32xf32> -> vector<16x32xf32>
    %32 = vector.broadcast %3 : vector<16x1xf32> to vector<16x32xf32>
    %33 = arith.addf %31, %32 : vector<16x32xf32>
    %cst_19 = arith.constant 5.000000e-01 : f32
    %34 = vector.broadcast %cst_19 : f32 to vector<16x32xf32>
    %35 = arith.mulf %34, %33 : vector<16x32xf32>
    %cst_20 = arith.constant 2.000000e+00 : f32
    %36 = math.sqrt %cst_20 : f32
    %37 = vector.broadcast %36 : f32 to vector<16x32xf32>
    %38 = arith.divf %33, %37 : vector<16x32xf32>
    %39 = math.erf %38 : vector<16x32xf32>
    %cst_21 = arith.constant 1.000000e+00 : f32
    %40 = vector.broadcast %cst_21 : f32 to vector<16x32xf32>
    %41 = arith.addf %40, %39 : vector<16x32xf32>
    %42 = arith.mulf %35, %41 : vector<16x32xf32>
    %43 = arith.truncf %42 : vector<16x32xf32> to vector<16x32xbf16>
    %cst_22 = arith.constant dense<0.000000e+00> : vector<8x32xf32>
    %44 = tpu.matmul %4, %43, %cst_22 {dimension_numbers = #tpu.dot_dimension_numbers<[1], [0], [0], [1], [0, 0, 1, 1], [], []>} : vector<8x16xbf16>, vector<16x32xbf16>, vector<8x32xf32> -> vector<8x32xf32>
    %45 = vector.broadcast %5 : vector<8x1xf32> to vector<8x32xf32>
    %46 = arith.addf %44, %45 : vector<8x32xf32>
    %47 = arith.addf %7, %46 : vector<8x32xf32>
    %c0_23 = arith.constant 0 : index
    %c0_24 = arith.constant 0 : index
    %c0_25 = arith.constant 0 : index
    %48 = vector.load %arg15[%c0_23, %c0_24, %c0_25] : memref<2x8x32xf32, #tpu.memory_space<vmem>>, vector<1x8x32xf32>
    %49 = vector.shape_cast %48 : vector<1x8x32xf32> to vector<8x32xf32>
    %50 = vector.shape_cast %47 : vector<8x32xf32> to vector<1x8x32xf32>
    tpu.vector_store %arg15[%c0_23, %c0_24, %c0_25], %50 {strides = array<i32>} : memref<2x8x32xf32, #tpu.memory_space<vmem>>, vector<1x8x32xf32>,
    %c1 = arith.constant 1 : index
    %c0_26 = arith.constant 0 : index
    %c0_27 = arith.constant 0 : index
    %51 = vector.load %arg1[%c1, %c0_26, %c0_27] : memref<2x8x32xf32, #tpu.memory_space<vmem>>, vector<1x8x32xf32>
    %52 = vector.shape_cast %51 : vector<1x8x32xf32> to vector<8x32xf32>
    %cst_28 = arith.constant dense<0.000000e+00> : vector<8xf32>
    %53 = vector.multi_reduction <add>, %52, %cst_28 [1] : vector<8x32xf32> to vector<8xf32>
    %54 = vector.shape_cast %53 : vector<8xf32> to vector<8x1xf32>
    %cst_29 = arith.constant 3.200000e+01 : f32
    %55 = vector.broadcast %cst_29 : f32 to vector<8x1xf32>
    %56 = arith.divf %54, %55 : vector<8x1xf32>
    %57 = vector.broadcast %56 : vector<8x1xf32> to vector<8x32xf32>
    %58 = arith.subf %52, %57 : vector<8x32xf32>
    %59 = arith.mulf %58, %58 : vector<8x32xf32>
    %cst_30 = arith.constant dense<0.000000e+00> : vector<8xf32>
    %60 = vector.multi_reduction <add>, %59, %cst_30 [1] : vector<8x32xf32> to vector<8xf32>
    %61 = vector.shape_cast %60 : vector<8xf32> to vector<8x1xf32>
    %cst_31 = arith.constant 3.200000e+01 : f32
    %62 = vector.broadcast %cst_31 : f32 to vector<8x1xf32>
    %63 = arith.divf %61, %62 : vector<8x1xf32>
    %64 = vector.broadcast %56 : vector<8x1xf32> to vector<8x32xf32>
    %65 = arith.subf %52, %64 : vector<8x32xf32>
    %cst_32 = arith.constant 9.99999974E-6 : f32
    %66 = vector.broadcast %cst_32 : f32 to vector<8x1xf32>
    %67 = arith.addf %63, %66 : vector<8x1xf32>
    %68 = math.rsqrt %67 : vector<8x1xf32>
    %69 = vector.broadcast %68 : vector<8x1xf32> to vector<8x32xf32>
    %70 = arith.mulf %65, %69 : vector<8x32xf32>
    %71 = vector.broadcast %0 : vector<1x32xf32> to vector<8x32xf32>
    %72 = arith.mulf %70, %71 : vector<8x32xf32>
    %73 = vector.broadcast %1 : vector<1x32xf32> to vector<8x32xf32>
    %74 = arith.addf %72, %73 : vector<8x32xf32>
    %75 = arith.truncf %74 : vector<8x32xf32> to vector<8x32xbf16>
    %cst_33 = arith.constant dense<0.000000e+00> : vector<16x32xf32>
    %76 = tpu.matmul %2, %75, %cst_33 {dimension_numbers = #tpu.dot_dimension_numbers<[1], [0], [0], [1], [0, 0, 1, 1], [], []>} : vector<16x8xbf16>, vector<8x32xbf16>, vector<16x32xf32> -> vector<16x32xf32>
    %77 = vector.broadcast %3 : vector<16x1xf32> to vector<16x32xf32>
    %78 = arith.addf %76, %77 : vector<16x32xf32>
    %cst_34 = arith.constant 5.000000e-01 : f32
    %79 = vector.broadcast %cst_34 : f32 to vector<16x32xf32>
    %80 = arith.mulf %79, %78 : vector<16x32xf32>
    %cst_35 = arith.constant 2.000000e+00 : f32
    %81 = math.sqrt %cst_35 : f32
    %82 = vector.broadcast %81 : f32 to vector<16x32xf32>
    %83 = arith.divf %78, %82 : vector<16x32xf32>
    %84 = math.erf %83 : vector<16x32xf32>
    %cst_36 = arith.constant 1.000000e+00 : f32
    %85 = vector.broadcast %cst_36 : f32 to vector<16x32xf32>
    %86 = arith.addf %85, %84 : vector<16x32xf32>
    %87 = arith.mulf %80, %86 : vector<16x32xf32>
    %88 = arith.truncf %87 : vector<16x32xf32> to vector<16x32xbf16>
    %cst_37 = arith.constant dense<0.000000e+00> : vector<8x32xf32>
    %89 = tpu.matmul %4, %88, %cst_37 {dimension_numbers = #tpu.dot_dimension_numbers<[1], [0], [0], [1], [0, 0, 1, 1], [], []>} : vector<8x16xbf16>, vector<16x32xbf16>, vector<8x32xf32> -> vector<8x32xf32>
    %90 = vector.broadcast %5 : vector<8x1xf32> to vector<8x32xf32>
    %91 = arith.addf %89, %90 : vector<8x32xf32>
    %92 = arith.addf %52, %91 : vector<8x32xf32>
    %c1_38 = arith.constant 1 : index
    %c0_39 = arith.constant 0 : index
    %c0_40 = arith.constant 0 : index
    %93 = vector.load %arg15[%c1_38, %c0_39, %c0_40] : memref<2x8x32xf32, #tpu.memory_space<vmem>>, vector<1x8x32xf32>
    %94 = vector.shape_cast %93 : vector<1x8x32xf32> to vector<8x32xf32>
    %95 = vector.shape_cast %92 : vector<8x32xf32> to vector<1x8x32xf32>
    tpu.vector_store %arg15[%c1_38, %c0_39, %c0_40], %95 {strides = array<i32>} : memref<2x8x32xf32, #tpu.memory_space<vmem>>, vector<1x8x32xf32>,
    %c0_41 = arith.constant 0 : index
    %c0_42 = arith.constant 0 : index
    %96 = vector.load %arg10[%c0_41, %c0_42] : memref<32x64xbf16, #tpu.memory_space<vmem>>, vector<32x64xbf16>
    %c0_43 = arith.constant 0 : index
    %c0_44 = arith.constant 0 : index
    %97 = vector.load %arg11[%c0_43, %c0_44] : memref<1x64xf32, #tpu.memory_space<vmem>>, vector<1x64xf32>
    %c0_45 = arith.constant 0 : index
    %c0_46 = arith.constant 0 : index
    %98 = vector.load %arg12[%c0_45, %c0_46] : memref<64x32xbf16, #tpu.memory_space<vmem>>, vector<64x32xbf16>
    %c0_47 = arith.constant 0 : index
    %c0_48 = arith.constant 0 : index
    %99 = vector.load %arg13[%c0_47, %c0_48] : memref<1x32xf32, #tpu.memory_space<vmem>>, vector<1x32xf32>
    %c0_49 = arith.constant 0 : index
    %c0_50 = arith.constant 0 : index
    %c0_51 = arith.constant 0 : index
    %100 = vector.load %arg15[%c0_49, %c0_50, %c0_51] : memref<2x8x32xf32, #tpu.memory_space<vmem>>, vector<2x8x32xf32>
    %101 = vector.shape_cast %100 : vector<2x8x32xf32> to vector<16x32xf32>
    %c0_52 = arith.constant 0 : index
    %c0_53 = arith.constant 0 : index
    %102 = vector.load %arg8[%c0_52, %c0_53] : memref<1x32xf32, #tpu.memory_space<vmem>>, vector<1x32xf32>
    %c0_54 = arith.constant 0 : index
    %c0_55 = arith.constant 0 : index
    %103 = vector.load %arg9[%c0_54, %c0_55] : memref<1x32xf32, #tpu.memory_space<vmem>>, vector<1x32xf32>
    %cst_56 = arith.constant dense<0.000000e+00> : vector<16xf32>
    %104 = vector.multi_reduction <add>, %101, %cst_56 [1] : vector<16x32xf32> to vector<16xf32>
    %105 = vector.shape_cast %104 : vector<16xf32> to vector<16x1xf32>
    %cst_57 = arith.constant 3.200000e+01 : f32
    %106 = vector.broadcast %cst_57 : f32 to vector<16x1xf32>
    %107 = arith.divf %105, %106 : vector<16x1xf32>
    %108 = vector.broadcast %107 : vector<16x1xf32> to vector<16x32xf32>
    %109 = arith.subf %101, %108 : vector<16x32xf32>
    %110 = arith.mulf %109, %109 : vector<16x32xf32>
    %cst_58 = arith.constant dense<0.000000e+00> : vector<16xf32>
    %111 = vector.multi_reduction <add>, %110, %cst_58 [1] : vector<16x32xf32> to vector<16xf32>
    %112 = vector.shape_cast %111 : vector<16xf32> to vector<16x1xf32>
    %cst_59 = arith.constant 3.200000e+01 : f32
    %113 = vector.broadcast %cst_59 : f32 to vector<16x1xf32>
    %114 = arith.divf %112, %113 : vector<16x1xf32>
    %115 = vector.broadcast %107 : vector<16x1xf32> to vector<16x32xf32>
    %116 = arith.subf %101, %115 : vector<16x32xf32>
    %cst_60 = arith.constant 9.99999974E-6 : f32
    %117 = vector.broadcast %cst_60 : f32 to vector<16x1xf32>
    %118 = arith.addf %114, %117 : vector<16x1xf32>
    %119 = math.rsqrt %118 : vector<16x1xf32>
    %120 = vector.broadcast %119 : vector<16x1xf32> to vector<16x32xf32>
    %121 = arith.mulf %116, %120 : vector<16x32xf32>
    %122 = vector.broadcast %102 : vector<1x32xf32> to vector<16x32xf32>
    %123 = arith.mulf %121, %122 : vector<16x32xf32>
    %124 = vector.broadcast %103 : vector<1x32xf32> to vector<16x32xf32>
    %125 = arith.addf %123, %124 : vector<16x32xf32>
    %126 = arith.truncf %125 : vector<16x32xf32> to vector<16x32xbf16>
    %cst_61 = arith.constant dense<0.000000e+00> : vector<16x64xf32>
    %127 = tpu.matmul %126, %96, %cst_61 {dimension_numbers = #tpu.dot_dimension_numbers<[1], [0], [0], [1], [0, 0, 1, 1], [], []>} : vector<16x32xbf16>, vector<32x64xbf16>, vector<16x64xf32> -> vector<16x64xf32>
    %128 = vector.broadcast %97 : vector<1x64xf32> to vector<16x64xf32>
    %129 = arith.addf %127, %128 : vector<16x64xf32>
    %cst_62 = arith.constant 5.000000e-01 : f32
    %130 = vector.broadcast %cst_62 : f32 to vector<16x64xf32>
    %131 = arith.mulf %130, %129 : vector<16x64xf32>
    %cst_63 = arith.constant 2.000000e+00 : f32
    %132 = math.sqrt %cst_63 : f32
    %133 = vector.broadcast %132 : f32 to vector<16x64xf32>
    %134 = arith.divf %129, %133 : vector<16x64xf32>
    %135 = math.erf %134 : vector<16x64xf32>
    %cst_64 = arith.constant 1.000000e+00 : f32
    %136 = vector.broadcast %cst_64 : f32 to vector<16x64xf32>
    %137 = arith.addf %136, %135 : vector<16x64xf32>
    %138 = arith.mulf %131, %137 : vector<16x64xf32>
    %139 = arith.truncf %138 : vector<16x64xf32> to vector<16x64xbf16>
    %cst_65 = arith.constant dense<0.000000e+00> : vector<16x32xf32>
    %140 = tpu.matmul %139, %98, %cst_65 {dimension_numbers = #tpu.dot_dimension_numbers<[1], [0], [0], [1], [0, 0, 1, 1], [], []>} : vector<16x64xbf16>, vector<64x32xbf16>, vector<16x32xf32> -> vector<16x32xf32>
    %141 = vector.broadcast %99 : vector<1x32xf32> to vector<16x32xf32>
    %142 = arith.addf %140, %141 : vector<16x32xf32>
    %143 = arith.addf %101, %142 : vector<16x32xf32>
    %144 = vector.shape_cast %143 : vector<16x32xf32> to vector<2x8x32xf32>
    %c0_66 = arith.constant 0 : index
    %c0_67 = arith.constant 0 : index
    %c0_68 = arith.constant 0 : index
    %145 = vector.load %arg14[%c0_66, %c0_67, %c0_68] : memref<2x8x32xf32, #tpu.memory_space<vmem>>, vector<2x8x32xf32>
    tpu.vector_store %arg14[%c0_66, %c0_67, %c0_68], %144 {strides = array<i32>} : memref<2x8x32xf32, #tpu.memory_space<vmem>>, vector<2x8x32xf32>,
    return
  }
  func.func @transform_0(%arg0: i32) -> (i32, i32, i32) {
    %c0_i32 = arith.constant 0 : i32
    %c0_i32_0 = arith.constant 0 : i32
    %c0_i32_1 = arith.constant 0 : i32
    return %arg0, %c0_i32, %c0_i32_0 : i32, i32, i32
  }
  func.func @transform_1(%arg0: i32) -> (i32, i32) {
    %c0_i32 = arith.constant 0 : i32
    %c0_i32_0 = arith.constant 0 : i32
    %c0_i32_1 = arith.constant 0 : i32
    return %c0_i32, %c0_i32_0 : i32, i32
  }
  func.func @transform_2(%arg0: i32) -> (i32, i32) {
    %c0_i32 = arith.constant 0 : i32
    %c0_i32_0 = arith.constant 0 : i32
    %c0_i32_1 = arith.constant 0 : i32
    return %c0_i32, %c0_i32_0 : i32, i32
  }
  func.func @transform_3(%arg0: i32) -> (i32, i32) {
    %c0_i32 = arith.constant 0 : i32
    %c0_i32_0 = arith.constant 0 : i32
    %c0_i32_1 = arith.constant 0 : i32
    return %c0_i32, %c0_i32_0 : i32, i32
  }
  func.func @transform_4(%arg0: i32) -> (i32, i32) {
    %c0_i32 = arith.constant 0 : i32
    %c0_i32_0 = arith.constant 0 : i32
    %c0_i32_1 = arith.constant 0 : i32
    return %c0_i32, %c0_i32_0 : i32, i32
  }
  func.func @transform_5(%arg0: i32) -> (i32, i32) {
    %c0_i32 = arith.constant 0 : i32
    %c0_i32_0 = arith.constant 0 : i32
    %c0_i32_1 = arith.constant 0 : i32
    return %c0_i32, %c0_i32_0 : i32, i32
  }
  func.func @transform_6(%arg0: i32) -> (i32, i32) {
    %c0_i32 = arith.constant 0 : i32
    %c0_i32_0 = arith.constant 0 : i32
    %c0_i32_1 = arith.constant 0 : i32
    return %c0_i32, %c0_i32_0 : i32, i32
  }
  func.func @transform_7(%arg0: i32) -> (i32, i32) {
    %c0_i32 = arith.constant 0 : i32
    %c0_i32_0 = arith.constant 0 : i32
    %c0_i32_1 = arith.constant 0 : i32
    return %c0_i32, %c0_i32_0 : i32, i32
  }
  func.func @transform_8(%arg0: i32) -> (i32, i32) {
    %c0_i32 = arith.constant 0 : i32
    %c0_i32_0 = arith.constant 0 : i32
    %c0_i32_1 = arith.constant 0 : i32
    return %c0_i32, %c0_i32_0 : i32, i32
  }
  func.func @transform_9(%arg0: i32) -> (i32, i32) {
    %c0_i32 = arith.constant 0 : i32
    %c0_i32_0 = arith.constant 0 : i32
    %c0_i32_1 = arith.constant 0 : i32
    return %c0_i32, %c0_i32_0 : i32, i32
  }
  func.func @transform_10(%arg0: i32) -> (i32, i32) {
    %c0_i32 = arith.constant 0 : i32
    %c0_i32_0 = arith.constant 0 : i32
    %c0_i32_1 = arith.constant 0 : i32
    return %c0_i32, %c0_i32_0 : i32, i32
  }
  func.func @transform_11(%arg0: i32) -> (i32, i32) {
    %c0_i32 = arith.constant 0 : i32
    %c0_i32_0 = arith.constant 0 : i32
    %c0_i32_1 = arith.constant 0 : i32
    return %c0_i32, %c0_i32_0 : i32, i32
  }
  func.func @transform_12(%arg0: i32) -> (i32, i32) {
    %c0_i32 = arith.constant 0 : i32
    %c0_i32_0 = arith.constant 0 : i32
    %c0_i32_1 = arith.constant 0 : i32
    return %c0_i32, %c0_i32_0 : i32, i32
  }
  func.func @transform_13(%arg0: i32) -> (i32, i32, i32) {
    %c0_i32 = arith.constant 0 : i32
    %c0_i32_0 = arith.constant 0 : i32
    %c0_i32_1 = arith.constant 0 : i32
    return %arg0, %c0_i32, %c0_i32_0 : i32, i32, i32
  }
}

</mosaic_0001>

<bundles_post_ra>
// kernel: tpu_custom_call.1
= control target key start
LH: loop header
LB: loop body
LE: loop exit
PB: predicated region body
PF: predicated region fallthrough
CT: control target
= control target key end

     0   :  { %s1528_s0 = inlined_call_operand.vmem [shape: f32[4,8,32], index: 0, kind: input, shape index: {}]   ;;  %s1529_s1 = inlined_call_operand.vmem [shape: f32[1,32], index: 1, kind: input, shape index: {}]   ;;  %s1530_s2 = inlined_call_operand.vmem [shape: f32[1,32], index: 2, kind: input, shape index: {}]   ;;  %s1531_s3 = inlined_call_operand.vmem [shape: bf16[16,8], index: 3, kind: input, shape index: {}]   ;;  %s1532_s4 = inlined_call_operand.vmem [shape: f32[16,1], index: 4, kind: input, shape index: {}]   ;;  %s1533_s5 = inlined_call_operand.vmem [shape: bf16[8,16], index: 5, kind: input, shape index: {}]   ;;  %s1534_s6 = inlined_call_operand.vmem [shape: f32[8,1], index: 6, kind: input, shape index: {}]   ;;  %s1535_s7 = inlined_call_operand.vmem [shape: f32[1,32], index: 7, kind: input, shape index: {}]   ;;  %s1536_s8 = inlined_call_operand.vmem [shape: f32[1,32], index: 8, kind: input, shape index: {}]   ;;  %s1537_s9 = inlined_call_operand.vmem [shape: bf16[32,64], index: 9, kind: input, shape index: {}]   ;;  %s1538_s10 = inlined_call_operand.vmem [shape: f32[1,64], index: 10, kind: input, shape index: {}]   ;;  %s1539_s11 = inlined_call_operand.vmem [shape: bf16[64,32], index: 11, kind: input, shape index: {}]   ;;  %s1540_s12 = inlined_call_operand.vmem [shape: f32[1,32], index: 12, kind: input, shape index: {}]   ;;  %s1541_s13 = inlined_call_operand.hbm [shape: f32[4,8,32], index: 13, kind: output, shape index: {}]  }
   0x1   :  { %1542 = sst [smem:[#allocation6_spill]] %s1528_s0 }
   0x2   :  { %1543 = sst [smem:[#allocation7_spill]] %s1529_s1 }
   0x3   :  { %18 = vsyncpa [#allocation4], 0 }
   0x4   :  { %20 = vsyncpa [#allocation4 + $0x1], 0  ;;  %s1320_s25 = smov 0   ;;  %s1322_s26 = smov 0  }
   0x5   :  { %s1324_s27 = smov 0   ;;  %s1326_s28 = smov 0  }
   0x6 LB: > { %s1341_s29 = sadd.s32 4294967295, %s1242_s28   ;;  %s1014_s30 = sadd.s32 4294967294, %s1242_s28   ;;  %s1242_s28 = sphi %s1326_s28, %s1551_s28   ;;  %s1238_s27 = sphi %s1324_s27, %s1550_s27   ;;  %s1234_s26 = sphi %s1322_s26, %s1549_s26   ;;  %s1230_s25 = sphi %s1320_s25, %s1548_s25  }
   0x7   : > { %s1345_s14 = sadd.s32 1, %s1242_s28   ;;  %s311_s15 = sadd.s32 1, %s1238_s27 }
   0x8   : > { %s308_s16 = ssub.s32 %s1242_s28, %s1345_s14  ;;  %p321_p0 = scmp.ne.s32.totalorder %s1238_s27, %s1234_s26 }
   0x9   : > { %p309_p1 = scmp.eq.s32.totalorder %s308_s16, 0  ;;  %p322_p2 = scmp.eq.s32.totalorder %s1341_s29, 1 }
   0xa   : > { %p327_p3 = scmp.ne.s32.totalorder %s1234_s26, %s1230_s25  ;;  %p328_p4 = scmp.eq.s32.totalorder %s1014_s30, 1 }
   0xb   : > { %s1356_s17 = scalar_select %p309_p1, %s1238_s27, %s311_s15  }
   0xc   : > { %p1358_p5 = por %p322_p2, %p321_p0  ;;  %p1362_p6 = por %p328_p4, %p327_p3 }
   0xd   : > { %p1017_p7 = scmp.ge.s32.totalorder %s1242_s28, 1  ;;  %p391_p8 = scmp.lt.s32.totalorder %s1242_s28, 3 }
   0xf   : > { %p392_p9 = pnand %p1017_p7, %p391_p8 }
  0x10   : > { %s1019_s20 = sshll.u32 (!%p392_p9), %s1341_s29, 1  ;;  %vm452_vm0 = vcmask (!%p392_p9), 261120   ;;  %s1546_s0 = sld [smem:[#allocation6_spill]] (!%p392_p9)  ;;  %v1244_v14 = vmov (!%p392_p9), 0.0   ;;  %vm1245_vm1 = vmmov (!%p392_p9), 0   ;;  %v447_v15 = vld [vmem:[%s1532_s4] sm:$0xff] (!%p392_p9) }
  0x11   : > { %395 = sbr.rel (%p392_p9) target bundleno = 1600 (0x640), region = 72  ;;  %p436_p10 = scmp.lt.s32.totalorder (!%p392_p9), %s1019_s20, 3  ;;  %1063 = vmatprep.subr.bf16.mxu0 (!%p392_p9), %v1244_v14  ;;  %1069 = vmatprep.subr.bf16.mxu1 (!%p392_p9), %v1244_v14  ;;  %v448_v16 = vld [vmem:[%s1532_s4 + $0x8] sm:$0xff] (!%p392_p9)  ;;  %v1246_v17 = vmov (!%p392_p9), 0   ;;  %v450_v18 = vld [vmem:[%s1534_s6] sm:$0xff] (!%p392_p9)  ;;  %vm501_vm2 = vcmask (!%p392_p9), 1043456  }
  0x12   : > { %1065 = vmatprep.mubr.msk.bf16.mxu0 (!%p392_p9), %vm1245_vm1, %v1244_v14  ;;  %1071 = vmatprep.mubr.msk.bf16.mxu1 (!%p392_p9), %vm1245_vm1, %v1244_v14  ;;  %s1547_s1 = sld [smem:[#allocation7_spill]] (!%p392_p9)  ;;  %v1022_v28 = vld [vmem:[%s1530_s2] ss:$0 sm:$0xff] (!%p392_p9)  ;;  %vm497_vm3 = vcmask (!%p392_p9), 64512   ;;  %vm563_vm4 = vcmask (!%p392_p9), 130048   ;;  %vm889_vm5 = vcmask (!%p392_p9), 523264  }
  0x13   : > { %1151 = vset.pattern.permute.xlu0 (!%p392_p9), %v1246_v17  ;;  %1152 = vset.pattern.permute.xlu1 (!%p392_p9), %v1246_v17  ;;  %v1153_v37 = vld [vmem:[%s1531_s3] sm:$0xff] (!%p392_p9)   ;;  %s432_s30 = sand.u32 (!%p392_p9), 1, %s1234_s26   ;;  %s1046_s23 = sshll.u32 (!%p392_p9), %s1341_s29, 8 }
  0x14   : > { %s1018_s15 = sshll.u32 (!%p392_p9), %s432_s30, 4  ;;  %s1487_s29 = scalar_lea.sflag (!%p392_p9), [#allocation4], %s432_s30 }
  0x18   : > { %s1553_s20 = smov (!%p436_p10, %s1019_s20), 3  ;;  %v1021_v26 = vld [vmem:[%s1547_s1] ss:$0 sm:$0xff]  ;;  %s1480_s1 = scalar_lea.hbm %s1541_s13, %s1046_s23 }
  0x19   : > { %s1020_s21 = sshll.u32 %s1553_s20, 3 }
  0x1a   : > { %s439_s24 = scalar_lea.vmem %s1546_s0, %s1020_s21  ;;  %s434_s21 = scalar_lea.vmem [#allocation3], %s1018_s15 }
  0x1b   : > { %v1372_v0 = vld [vmem:[%s439_s24] sm:$0xff]  ;;  %v1374_v1 = vld [vmem:[%s439_s24 + $0x8] sm:$0xff]  ;;  %s952_s22 = sshll.u32 %s434_s21, 4  ;;  %s1247_s0 = smov [#allocation3]   ;;  %s1482_s22 = int_to_ptr.vmem [resolvable:$true] %s952_s22 }
  0x1c   : > { %v453_v2 = vsel %vm452_vm0, %v1372_v0, 0.0  ;;  %v611_v3 = vsel %vm452_vm0, %v1374_v1, 0.0  ;;  %s1180_s15 = scalar_lea.vmem %s1482_s22, 256  ;;  %s1184_s16 = sshll.u32 %s1247_s0, 4  ;;  %s1185_s16 = int_to_ptr.vmem [resolvable:$false] %s1184_s16 }
  0x1d   : > { %454 = vadd.xlane.f32.xlu0 %v453_v2  ;;  %p1181_p11 = scmp.ne.s32.totalorder %s1482_s22, %s1180_s15  ;;  %s1186_s20 = scalar_lea.vmem %s1185_s16, 512 }
  0x1e   : > { %p1187_p0 = scmp.lt.s32.totalorder %s1482_s22, %s1185_s16  ;;  %p1188_p1 = scmp.lt.s32.totalorder %s1186_s20, %s1180_s15 }
  0x1f   : > { %p1182_p12 = pnand %p1181_p11, %p1358_p5 }
  0x20   : > { %p1189_p2 = por %p1188_p1, %p1187_p0 }
  0x21   : > { %612 = vadd.xlane.f32.xlu0 %v611_v3  ;;  %p1183_p13 = pneg %p1182_p12 }
  0x23   : > { %p1190_p3 = pnand %p1189_p2, %p1183_p13 }
  0x37   : > { %484 = vperm.xlu0 %1151, %v447_v15  }
  0xaa   : > { %v455_v4 = vpop.xlane.xlu0 %454 }
  0xab   : > { %v457_v5 = vmul.f32 0.03125, %v455_v4 }
  0xad   : > { %v458_v6 = vsub.f32 %v1372_v0, %v457_v5 }
  0xae   : > { %v613_v7 = vpop.xlane.xlu0 %612 }
  0xaf   : > { %v614_v8 = vmul.f32 0.03125, %v613_v7  ;;  %v459_v9 = vmul.f32 %v458_v6, %v458_v6  ;;  %v449_v7 = vld [vmem:[%s1533_s5] sm:$0xf] }
  0xb1   : > { %v615_v10 = vsub.f32 %v1374_v1, %v614_v8  ;;  %v460_v11 = vsel %vm452_vm0, %v459_v9, 0.0 }
  0xb2   : > { %461 = vadd.xlane.f32.xlu1 %v460_v11 }
  0xb3   : > { %v616_v12 = vmul.f32 %v615_v10, %v615_v10 }
  0xb5   : > { %v617_v13 = vsel %vm452_vm0, %v616_v12, 0.0 }
  0xb6   : > { %618 = vadd.xlane.f32.xlu1 %v617_v13  ;;  %v485_v40 = vpop.permute.xlu0 %484 }
  0xc7   : > { %489 = vperm.xlu1 %1152, %v448_v16  }
  0xcb   : > { %560 = vperm.xlu1 %1152, %v450_v18  }
 0x13f   : > { %v462_v19 = vpop.xlane.xlu1 %461 }
 0x140   : > { %v463_v20 = vmul.f32 0.03125, %v462_v19 }
 0x142   : > { %v464_v21 = vadd.f32 1e-05, %v463_v20 }
 0x143   : > { %v619_v22 = vpop.xlane.xlu1 %618 }
 0x144   : > { %1160 = vrsqrt.f32 %v464_v21  ;;  %v620_v23 = vmul.f32 0.03125, %v619_v22 }
 0x146   : > { %v621_v24 = vadd.f32 1e-05, %v620_v23 }
 0x147   : > { %v490_v45 = vpop.permute.xlu1 %489 }
 0x148   : > { %1162 = vrsqrt.f32 %v621_v24 }
 0x14b   : > { %v561_v16 = vpop.permute.xlu1 %560 }
 0x14e   : > { %v1161_v25 = vpop.eup %1160 }
 0x14f   : > { %v466_v27 = vmul.f32 %v1161_v25, %v458_v6 }
 0x151   : > { %v473_v29 = vmul.f32 %v1021_v26, %v466_v27 }
 0x152   : > { %v1163_v30 = vpop.eup %1162 }
 0x153   : > { %v480_v31 = vadd.f32 %v1022_v28, %v473_v29  ;;  %v623_v32 = vmul.f32 %v1163_v30, %v615_v10 }
 0x155   : > { %v481_v33 = vpack.c.bf16 %v480_v31, %v480_v31  ;;  %v624_v34 = vmul.f32 %v1021_v26, %v623_v32 }
 0x157   : > { %v503_v35 = vsel %vm501_vm2, %v481_v33, 0  ;;  %v625_v36 = vadd.f32 %v1022_v28, %v624_v34 }
 0x158   : > { %1064 = vmatpush3.bf16.msra.mxu0 %v503_v35 }
 0x159   : > { %v626_v38 = vpack.c.bf16 %v625_v36, %v625_v36  ;;  %1075 = vmatprep.subr.bf16.mxu0 %v1244_v14 }
 0x15b   : > { %v628_v39 = vsel %vm501_vm2, %v626_v38, 0  ;;  %1066 = vmatmul.mubr.msk.bf16.vlgmr.msra.gmra.mrb[0].mxu0 %vm497_vm3, %v1153_v37 }
 0x15c   : > { %1076 = vmatpush3.bf16.msra.mxu0 %v628_v39  ;;  %1077 = vmatprep.mubr.msk.bf16.mxu0 %vm1245_vm1, %v1244_v14 }
 0x15d   : > { %1087 = vmatprep.subr.bf16.mxu0 %v1244_v14 }
 0x163   : > { %1078 = vmatmul.mubr.msk.bf16.vlgmr.msra.gmra.mrb[4].mxu0 %vm497_vm3, %v1153_v37 }
 0x164   : > { %1091 = vmatprep.mubr.msk.bf16.mxu0 %vm1245_vm1, %v1244_v14 }
 0x22e   : > { %v539_v41 = vpop.f32.mrb[0].mxu0 }
 0x22f   : > { %v540_v42 = vadd.f32 %v539_v41, %v485_v40  ;;  %v1067_v43 = vpop.f32.mrb[1].mxu0  ;;  %v1154_v41 = vld [vmem:[%s1537_s9] sm:$0xff]  }
 0x230   : > { %v542_v44 = vpop.f32.mrb[2].mxu0  ;;  %1088 = vmatpush3.bf16.msra.mxu0 %v1154_v41 }
 0x231   : > { %v549_v46 = vmul.f32 0.70710677, %v540_v42  ;;  %v543_v47 = vadd.f32 %v542_v44, %v490_v45  ;;  %v1068_v48 = vpop.f32.mrb[3].mxu0  ;;  %v546_v61 = vmul.f32 0.5, %v540_v42  ;;  %1089 = vmatprep.subr.bf16.mxu0 %v1244_v14  ;;  %v1155_v42 = vld [vmem:[%s1537_s9 + $0x8] sm:$0xff]  }
 0x233   : > { %1164 = verf.f32 %v549_v46  ;;  %v550_v49 = vmul.f32 0.70710677, %v543_v47  ;;  %v547_v62 = vmul.f32 0.5, %v543_v47 }
 0x234   : > { %1090 = vmatpush3.bf16.msra.mxu0 %v1155_v42 }
 0x235   : > { %1166 = verf.f32 %v550_v49 }
 0x236   : > { %v664_v50 = vpop.f32.mrb[4].mxu0 }
 0x237   : > { %v665_v51 = vadd.f32 %v664_v50, %v485_v40  ;;  %v1079_v52 = vpop.f32.mrb[5].mxu0 }
 0x238   : > { %v667_v53 = vpop.f32.mrb[6].mxu0 }
 0x239   : > { %v673_v54 = vmul.f32 0.70710677, %v665_v51  ;;  %v668_v55 = vadd.f32 %v667_v53, %v490_v45  ;;  %v1080_v56 = vpop.f32.mrb[7].mxu0  ;;  %v671_v9 = vmul.f32 0.5, %v665_v51  ;;  %v1029_v51 = vld [vmem:[%s1535_s7] ss:$0 sm:$0xff] }
 0x23b   : > { %1168 = verf.f32 %v673_v54  ;;  %v674_v57 = vmul.f32 0.70710677, %v668_v55  ;;  %v672_v10 = vmul.f32 0.5, %v668_v55  ;;  %v1030_v55 = vld [vmem:[%s1536_s8] ss:$0 sm:$0xff] }
 0x23d   : > { %v1165_v58 = vpop.eup %1164  ;;  %1170 = verf.f32 %v674_v57 }
 0x23e   : > { %v553_v59 = vadd.f32 1.0, %v1165_v58 }
 0x23f   : > { %v1167_v60 = vpop.eup %1166 }
 0x240   : > { %v554_v63 = vadd.f32 1.0, %v1167_v60  ;;  %v555_v2 = vmul.f32 %v553_v59, %v546_v61  ;;  %v1156_v60 = vld [vmem:[%s1539_s11] sm:$0xff]   ;;  %v1157_v61 = vld [vmem:[%s1539_s11 + $0x8] sm:$0xff]  }
 0x242   : > { %v556_v3 = vmul.f32 %v554_v63, %v547_v62  ;;  %v1158_v62 = vld [vmem:[%s1539_s11 + $0x10] sm:$0xff]   ;;  %v1159_v63 = vld [vmem:[%s1539_s11 + $0x18] sm:$0xff]  }
 0x244   : > { %v557_v4 = vpack.c.bf16 %v556_v3, %v555_v2  ;;  %v1031_v2 = vld [vmem:[%s1538_s10] ss:$0 sm:$0xff] }
 0x245   : > { %v1169_v5 = vpop.eup %1168 }
 0x246   : > { %v677_v6 = vadd.f32 1.0, %v1169_v5  ;;  %1070 = vmatpush3.bf16.msra.mxu1 %v557_v4 }
 0x247   : > { %v1171_v8 = vpop.eup %1170  ;;  %1081 = vmatprep.subr.bf16.mxu1 %v1244_v14 }
 0x248   : > { %v678_v11 = vadd.f32 1.0, %v1171_v8  ;;  %v679_v12 = vmul.f32 %v677_v6, %v671_v9 }
 0x249   : > { %1072 = vmatmul.mubr.msk.bf16.vlgmr.msra.gmra.mrb[0].mxu1 %vm563_vm4, %v449_v7 }
 0x24a   : > { %v680_v13 = vmul.f32 %v678_v11, %v672_v10  ;;  %1083 = vmatprep.mubr.msk.bf16.mxu1 %vm1245_vm1, %v1244_v14 }
 0x24c   : > { %v681_v15 = vpack.c.bf16 %v680_v13, %v679_v12 }
 0x24e   : > { %1082 = vmatpush3.bf16.msra.mxu1 %v681_v15 }
 0x24f   : > { %1095 = vmatprep.subr.bf16.mxu1 %v1244_v14 }
 0x251   : > { %1084 = vmatmul.mubr.msk.bf16.vlgmr.msra.gmra.mrb[4].mxu1 %vm563_vm4, %v449_v7 }
 0x252   : > { %1103 = vmatprep.mubr.msk.bf16.mxu1 %vm1245_vm1, %v1244_v14  ;;  %1096 = vmatpush3.bf16.msra.mxu1 %v1156_v60 }
 0x253   : > { %1097 = vmatprep.subr.bf16.mxu1 %v1244_v14 }
 0x256   : > { %1098 = vmatpush3.bf16.msra.mxu1 %v1157_v61 }
 0x257   : > { %1099 = vmatprep.subr.bf16.mxu1 %v1244_v14 }
 0x25a   : > { %1100 = vmatpush3.bf16.msra.mxu1 %v1158_v62 }
 0x25b   : > { %1101 = vmatprep.subr.bf16.mxu1 %v1244_v14 }
 0x25e   : > { %1102 = vmatpush3.bf16.msra.mxu1 %v1159_v63 }
 0x31c   : > { %v601_v17 = vpop.f32.mrb[0].mxu1 }
 0x31d   : > { %v602_v18 = vadd.f32 %v601_v17, %v561_v16  ;;  %v1073_v19 = vpop.f32.mrb[1].mxu1 }
 0x31e   : > { %v604_v20 = vpop.f32.mrb[2].mxu1 }
 0x31f   : > { %v607_v21 = vadd.f32 %v602_v18, %v1372_v0  ;;  %v1074_v22 = vpop.f32.mrb[3].mxu1  ;;  %v1035_v20 = vld [vmem:[%s1540_s12] ss:$0 sm:$0xff] }
 0x321   : > { %608 = vst.msk [vmem:[#allocation2] sm:$0xff] %vm452_vm0, %v607_v21 }
 0x324   : > { %v716_v23 = vpop.f32.mrb[4].mxu1 }
 0x325   : > { %v717_v24 = vadd.f32 %v716_v23, %v561_v16  ;;  %v1085_v25 = vpop.f32.mrb[5].mxu1 }
 0x326   : > { %v719_v26 = vpop.f32.mrb[6].mxu1 }
 0x327   : > { %v722_v27 = vadd.f32 %v1374_v1, %v717_v24  ;;  %v1086_v28 = vpop.f32.mrb[7].mxu1 }
 0x328   : > { %v1426_v29 = vld [vmem:[#allocation2] sm:$0xff] }
 0x329   : > { %724 = vst.msk [vmem:[#allocation2 + $0x8] sm:$0xff] %vm452_vm0, %v722_v27  ;;  %v743_v30 = vsel %vm452_vm0, %v1426_v29, 0.0 }
 0x32a   : > { %744 = vadd.xlane.f32.xlu1 %v743_v30 }
 0x330   : > { %v1431_v31 = vld [vmem:[#allocation2 + $0x8] sm:$0xff] }
 0x331   : > { %v746_v0 = vsel %vm452_vm0, %v1431_v31, 0.0 }
 0x332   : > { %747 = vadd.xlane.f32.xlu0 %v746_v0 }
 0x3b7   : > { %v745_v32 = vpop.xlane.xlu1 %744 }
 0x3b8   : > { %v749_v33 = vmul.f32 0.03125, %v745_v32 }
 0x3ba   : > { %v751_v34 = vsub.f32 %v1426_v29, %v749_v33 }
 0x3bc   : > { %v753_v1 = vmul.f32 %v751_v34, %v751_v34 }
 0x3be   : > { %v755_v35 = vsel %vm452_vm0, %v753_v1, 0.0 }
 0x3bf   : > { %756 = vadd.xlane.f32.xlu1 %v755_v35  ;;  %v748_v36 = vpop.xlane.xlu0 %747 }
 0x3c0   : > { %v750_v37 = vmul.f32 0.03125, %v748_v36 }
 0x3c2   : > { %v752_v38 = vsub.f32 %v1431_v31, %v750_v37 }
 0x3c4   : > { %v754_v39 = vmul.f32 %v752_v38, %v752_v38 }
 0x3c6   : > { %v758_v40 = vsel %vm452_vm0, %v754_v39, 0.0 }
 0x3c7   : > { %759 = vadd.xlane.f32.xlu1 %v758_v40 }
 0x44c   : > { %v757_v43 = vpop.xlane.xlu1 %756 }
 0x44d   : > { %v761_v44 = vmul.f32 0.03125, %v757_v43 }
 0x44f   : > { %v763_v45 = vadd.f32 1e-05, %v761_v44 }
 0x451   : > { %1172 = vrsqrt.f32 %v763_v45 }
 0x454   : > { %v760_v46 = vpop.xlane.xlu1 %759 }
 0x455   : > { %v762_v47 = vmul.f32 0.03125, %v760_v46 }
 0x457   : > { %v764_v48 = vadd.f32 1e-05, %v762_v47 }
 0x459   : > { %1174 = vrsqrt.f32 %v764_v48 }
 0x45b   : > { %v1173_v49 = vpop.eup %1172 }
 0x45c   : > { %v767_v50 = vmul.f32 %v1173_v49, %v751_v34 }
 0x45e   : > { %v775_v53 = vmul.f32 %v1029_v51, %v767_v50 }
 0x460   : > { %v783_v57 = vadd.f32 %v1030_v55, %v775_v53 }
 0x463   : > { %v1175_v52 = vpop.eup %1174 }
 0x464   : > { %v768_v54 = vmul.f32 %v1175_v52, %v752_v38 }
 0x466   : > { %v776_v56 = vmul.f32 %v1029_v51, %v768_v54 }
 0x468   : > { %v784_v58 = vadd.f32 %v1030_v55, %v776_v56 }
 0x46a   : > { %v785_v59 = vpack.c.bf16 %v784_v58, %v783_v57 }
 0x46c   : > { %1092 = vmatmul.mubr.msk.bf16.vlgmr.msra.gmra.mrb[8].mxu0 %vm452_vm0, %v785_v59 }
 0x53f   : > { %v841_v3 = vpop.f32.mrb[8].mxu0 }
 0x540   : > { %v842_v4 = vadd.f32 %v1031_v2, %v841_v3  ;;  %v1093_v5 = vpop.f32.mrb[9].mxu0 }
 0x541   : > { %v844_v6 = vpop.f32.mrb[10].mxu0 }
 0x542   : > { %v850_v7 = vmul.f32 0.70710677, %v842_v4  ;;  %v845_v8 = vadd.f32 %v1031_v2, %v844_v6  ;;  %v1094_v9 = vpop.f32.mrb[11].mxu0  ;;  %v848_v13 = vmul.f32 0.5, %v842_v4 }
 0x544   : > { %1176 = verf.f32 %v850_v7  ;;  %v851_v10 = vmul.f32 0.70710677, %v845_v8  ;;  %v849_v15 = vmul.f32 0.5, %v845_v8 }
 0x546   : > { %1178 = verf.f32 %v851_v10 }
 0x54e   : > { %v1177_v14 = vpop.eup %1176 }
 0x54f   : > { %v854_v11 = vadd.f32 1.0, %v1177_v14 }
 0x550   : > { %v1179_v12 = vpop.eup %1178 }
 0x551   : > { %v855_v16 = vadd.f32 1.0, %v1179_v12  ;;  %v856_v17 = vmul.f32 %v854_v11, %v848_v13 }
 0x553   : > { %v857_v18 = vmul.f32 %v855_v16, %v849_v15 }
 0x555   : > { %v858_v19 = vpack.c.bf16 %v857_v18, %v856_v17 }
 0x557   : > { %1104 = vmatmul.mubr.msk.bf16.vlgmr.msra.gmra.mrb[8].mxu1 %vm889_vm5, %v858_v19 }
 0x62a   : > { %v927_v21 = vpop.f32.mrb[8].mxu1 }
 0x62b   : > { %v928_v22 = vadd.f32 %v1035_v20, %v927_v21  ;;  %v1105_v23 = vpop.f32.mrb[9].mxu1 }
 0x62c   : > { %v930_v24 = vpop.f32.mrb[10].mxu1 }
 0x62d   : > { %v934_v25 = vadd.f32 %v928_v22, %v1426_v29  ;;  %v931_v26 = vadd.f32 %v1035_v20, %v930_v24  ;;  %v1106_v27 = vpop.f32.mrb[11].mxu1 }
 0x62f   : > { %936 = vst.msk [vmem:[%s434_s21] sm:$0xff] %vm452_vm0, %v934_v25  ;;  %v935_v28 = vadd.f32 %v931_v26, %v1431_v31 }
 0x631   : > { %937 = vst.msk [vmem:[%s434_s21 + $0x8] sm:$0xff] %vm452_vm0, %v935_v28 }
 0x632   : > { %1193 = shalt.err (!%p1190_p3)
}
 0x633   : > { %s1194_s30 = scalar_lea.hbm %s1480_s1, 256  ;;  %s1198_s24 = scalar_lea.hbm %s1541_s13, 512 }
 0x634   : > { %p1195_p4 = scmp.ne.s32.totalorder %s1480_s1, %s1194_s30  ;;  %p1199_p9 = scmp.lt.u32.totalorder %s1480_s1, %s1541_s13 }
 0x635   : > { %p1200_p10 = scmp.lt.u32.totalorder %s1198_s24, %s1194_s30  ;;  %p1202_p12 = scmp.lt.u32.totalorder %s1194_s30, %s1480_s1 }
 0x636   : > { %p1196_p7 = pnand %p1195_p4, %p1358_p5 }
 0x637   : > { %p1201_p11 = por %p1200_p10, %p1199_p9 }
 0x638   : > { %p1197_p8 = pneg %p1196_p7 }
 0x639   : > { %p1203_p13 = por %p1202_p12, %p1201_p11 }
 0x63b   : > { %p1204_p0 = pnand %p1203_p13, %p1197_p8 }
 0x63d   : > { %1207 = shalt.err (!%p1204_p0)
}
 0x63e   : > { %s1248_s15 = smov 128   ;;  %s1249_s20 = smov 8  }
 0x63f   : > { %1107 = dma.vmem_to_hbm [thread:$0]  (%p1358_p5), %s1482_s22, 256, %s1480_s1, %s1487_s29, %s1248_s15, %s1248_s15, %s1249_s20  }
 0x640 PF: > { %p1113_p1 = scmp.ge.s32.totalorder %s1242_s28, 2  ;;  %s967_s21 = sand.u32 1, %s1230_s25  }
 0x641   : > { %s968_s30 = scalar_lea.sflag [#allocation4], %s967_s21 }
 0x642   : > { %p1110_p2 = pnand %p1113_p1, %p1362_p6 }
 0x644   : > { %1225 = dma.done.wait (!%p1110_p2), %s968_s30, 256  }
 0x645   : > { %1227 = vsyncadd (!%p1110_p2), %s968_s30, 4294967040  ;;  %p23_p3 = scmp.ge.s32.totalorder %s1345_s14, 4   ;;  %s1548_s25 = smov %s1234_s26 }
 0x646   : > { %s1549_s26 = smov %s1238_s27  ;;  %s1550_s27 = smov %s1356_s17 }
 0x647   : > { %s1551_s28 = smov %s1345_s14  ;;  %25 = sbr.rel (!%p23_p3) target bundleno = 6 (0x6), region = 109 }
 0x64e   :  { %973 = vsyncpa [#allocation4], 1 }
 0x64f   :  { %975 = vsyncpa [#allocation4 + $0x1], 1 }

</bundles_post_ra>
